<compile_context>
chip_gen: v6e
topology: v6e:2x2x1
jax: 0.10.0
libtpu: 0.0.40
codegen_flags: <defaults>
</compile_context>

<pallas_src>
import functools
import math

import jax
import jax.numpy as jnp
from jax.experimental import pallas as pl
from jax.experimental.pallas import tpu as pltpu

_LANE = 128
_SUBLANE_MULT = {4: 8, 2: 16, 1: 32}      # dense second-minor tile per itemsize
_PER_BLOCK_CAP_BYTES = 4 << 20            # per-operand VMEM block cap
_HEADROOM_BYTES = 4 << 20                 # Mosaic internal scratch headroom


# ----------------------------- helpers ---------------------------------------

def _physical_vmem_bytes():
    """Best-effort per-TensorCore VMEM capacity query; conservative fallback."""
    try:
        info = pltpu.get_tpu_info()
        for attr in ("vmem_capacity_bytes", "vmem_bytes", "vmem_size_bytes"):
            v = getattr(info, attr, None)
            if v:
                return int(v)
    except Exception:
        pass
    return 64 << 20   # safe lower bound across v5e/v6e (128 MiB) and v7x (64 MiB)


def _largest_aligned_divisor(n, cap):
    """Largest divisor of `n` that is a multiple of 128 and <= cap (n % 128 == 0)."""
    d = (max(_LANE, min(cap, n)) // _LANE) * _LANE
    while d >= _LANE:
        if n % d == 0:
            return d
        d -= _LANE
    return _LANE


def _choose_tile_b(rows, cap_b, sub_mult, periods):
    """Pick a row tile compatible with every broadcast period.

    A period p (1 < p < rows) is compatible with tile tb iff p % tb == 0
    (modulo index_map) or tb % p == 0 (whole-period block + in-kernel tile).
    Returns (tile_b, incompatible_periods_to_materialize).
    """
    cap_b = max(1, min(cap_b, rows))

    def compat(tb):
        return all(p % tb == 0 or tb % p == 0 for p in periods)

    def legal(tb):            # Mosaic block layout rule: %8 or full row extent
        return tb % 8 == 0 or tb == rows

    tb = (cap_b // sub_mult) * sub_mult
    while tb >= sub_mult:
        if compat(tb) and legal(tb):
            return tb, ()
        tb -= sub_mult
    if compat(cap_b) and legal(cap_b):
        return cap_b, ()
    # TODO(synk): pathological broadcast-period mix; fall back to a legal tile
    # and materialize only the offending broadcast operands (rare path).
    tb = (cap_b // sub_mult) * sub_mult
    if tb < 8:
        tb = min(rows, cap_b)
    bad = tuple(p for p in periods if not (p % tb == 0 or tb % p == 0))
    return tb, bad


# ----------------------------- kernel ---------------------------------------

def _reducer_kernel(*refs, n_in, operator, activation, compute_dtype):
    """Elementwise reduction of n_in VMEM blocks + activation (pure VPU)."""
    o_ref = refs[n_in]
    tile_b = o_ref.shape[0]

    if operator == "add":
        op = lambda a, b: a + b
    else:                                   # "mul" (validated in the wrapper)
        op = lambda a, b: a * b

    # Pre-combine operands that share a block row-count, so broadcast operands
    # are reduced among themselves before touching the dense accumulator once.
    groups = {}
    for k in range(n_in):
        x = refs[k][...].astype(compute_dtype)
        br = x.shape[0]
        groups[br] = op(groups[br], x) if br in groups else x

    acc = None
    for br in sorted(groups, reverse=True):   # start acc from the densest block
        v = groups[br]
        if br != tile_b and br != 1:
            # Whole-period broadcast block: replicate rows on the VPU.
            v = jnp.tile(v, (tile_b // br, 1))
        acc = v if acc is None else op(acc, v)   # (1, c) broadcasts via the VPU

    if activation == "relu":
        acc = jnp.maximum(acc, 0)
    elif activation == "tanh":
        acc = jnp.tanh(acc)
    elif activation == "sigmoid":
        acc = jax.nn.sigmoid(acc)
    # "identity": nothing to do

    o_ref[...] = jnp.broadcast_to(acc, o_ref.shape).astype(o_ref.dtype)


# ----------------------------- wrapper ---------------------------------------

def reducer_forward(tensors, *, operator="add", activation="relu"):
    """Pallas-backed equivalent of Reducer.forward on a tuple of tensors."""
    tensors = [jnp.asarray(t) for t in tensors]
    if not tensors:
        raise ValueError("Reducer needs at least one input tensor")
    if operator not in ("add", "mul"):
        raise ValueError(f"unknown operator: {operator}")
    if activation not in ("identity", "relu", "tanh", "sigmoid"):
        raise ValueError(f"unknown activation: {activation}")

    max_rank = max(t.ndim for t in tensors)
    min_rank = min(t.ndim for t in tensors)
    target = next(t for t in tensors if t.ndim == max_rank)
    tgt_shape = tuple(target.shape)

    # phlower broadcast rule: a lower-rank tensor matches the trailing dims of
    # the highest-rank tensor and is broadcast over its leading dims.
    for t in tensors:
        if tuple(t.shape) != tgt_shape[max_rank - t.ndim:]:
            raise ValueError(
                f"tensor of shape {tuple(t.shape)} is not broadcastable to "
                f"{tgt_shape}")

    out_dtype = jnp.result_type(*(t.dtype for t in tensors))
    itemsize = jnp.dtype(out_dtype).itemsize
    sub_mult = max([_SUBLANE_MULT.get(itemsize, 8)]
                   + [_SUBLANE_MULT.get(jnp.dtype(t.dtype).itemsize, 8)
                      for t in tensors])
    # bf16 add/relu stays in bf16 (native VPU on v6e/v7x); low-precision mul
    # chains get an f32 accumulator (last-ulp differences vs torch accepted).
    if (operator == "mul" and jnp.issubdtype(out_dtype, jnp.floating)
            and itemsize < 4):
        compute_dtype = jnp.float32
    else:
        compute_dtype = out_dtype

    # ---- 2-D view at the broadcast boundary ----------------------------------
    boundary = max_rank - min_rank
    lane_g = max(1, math.prod(tgt_shape[boundary:]))
    total = max(1, math.prod(tgt_shape))
    rows_g = total // lane_g
    row_counts = [max(1, math.prod(t.shape)) // lane_g for t in tensors]
    n_in = len(tensors)

    # ---- generation-aware VMEM budget -----------------------------------------
    phys_vmem = _physical_vmem_bytes()
    budget_total = min(3 * phys_vmem // 4, 64 << 20)   # v7x: 48 MiB, v5e/v6e: 64 MiB
    block_budget = max(_LANE * sub_mult * itemsize,
                       min(_PER_BLOCK_CAP_BYTES, budget_total // (2 * (n_in + 1))))

    # ---- fold the lane axis so blocks are lane- and sublane-dense -------------
    if lane_g % _LANE == 0:
        need_l1 = -(-sub_mult // rows_g)                      # ceil
        cap_l2 = min(
            lane_g,
            max(_LANE, (block_budget // (itemsize * sub_mult)) // _LANE * _LANE),
            max(_LANE, (lane_g // need_l1) // _LANE * _LANE))
        L2 = _largest_aligned_divisor(lane_g, cap_l2)
    else:
        # TODO(synk): lane extent not a multiple of 128; keep the un-folded
        # (possibly masked) view instead of re-factoring across row boundaries.
        L2 = lane_g
    L1 = lane_g // L2

    rows_p = rows_g * L1                     # folded row count of the output
    b_counts = [b * L1 for b in row_counts]  # folded row count per operand

    # ---- tile selection (prefer full-lane tiles; shrink rows first) ------------
    if L2 * itemsize * max(1, min(rows_p, sub_mult)) <= block_budget or L2 <= _LANE:
        tile_c = L2
        grid_cols = 1
    else:
        tile_c = max(_LANE, (block_budget
                             // (itemsize * max(1, min(rows_p, sub_mult))))
                     // _LANE * _LANE)
        tile_c = min(tile_c, L2)
        grid_cols = pl.cdiv(L2, tile_c)

    cap_b = max(1, block_budget // (itemsize * tile_c))
    periods = sorted({b for b in b_counts if 1 < b < rows_p})
    tile_b, bad_periods = _choose_tile_b(rows_p, cap_b, sub_mult, periods)
    grid_rows = pl.cdiv(rows_p, tile_b)

    # ---- grid & index maps -----------------------------------------------------
    if grid_cols > 1:
        # rows innermost: constant-index broadcast blocks are not re-DMA'd.
        grid = (grid_cols, grid_rows)
        semantics = ("parallel", "parallel")

        def full_map(j, i):
            return (i, j)

        def const_map(j, i):
            return (0, j)

        def make_mod_map(nb):
            return lambda j, i, nb=nb: (i % nb, j)
    else:
        grid = (grid_rows,)
        semantics = ("parallel",)

        def full_map(i):
            return (i, 0)

        def const_map(i):
            return (0, 0)

        def make_mod_map(nb):
            return lambda i, nb=nb: (i % nb, 0)

    operands, in_specs, plan_blocks = [], [], []
    for t, bp in zip(tensors, b_counts):
        x2d = t.reshape(bp, L2)
        if bp in bad_periods:
            # TODO(synk): rare pathological period; materialize this operand.
            x2d = jnp.tile(x2d, (rows_p // bp, 1))
            bp = rows_p
        if bp == rows_p:
            blk, imap = (tile_b, tile_c), full_map                 # dense operand
        elif bp == 1:
            blk, imap = (1, tile_c), const_map                     # VPU sublane bcast
        elif tile_b % bp == 0:
            blk, imap = (bp, tile_c), const_map                    # whole-period block
        else:                                                      # bp % tile_b == 0
            blk, imap = (tile_b, tile_c), make_mod_map(bp // tile_b)
        operands.append(x2d)
        in_specs.append(pl.BlockSpec(blk, imap))
        plan_blocks.append((blk, x2d.dtype))

    out_spec = pl.BlockSpec((tile_b, tile_c), full_map)
    plan_blocks.append(((tile_b, tile_c), out_dtype))

    # ---- vmem_limit derived from the actual (padded, double-buffered) plan -----
    need = 0
    for (br, bc), dt in plan_blocks:
        it = jnp.dtype(dt).itemsize
        sm = _SUBLANE_MULT.get(it, 8)
        pr = -(-br // sm) * sm
        pc = -(-bc // _LANE) * _LANE
        need += 2 * pr * pc * it
    vmem_limit = int(max(need + _HEADROOM_BYTES, 32 << 20))

    kernel = functools.partial(
        _reducer_kernel, n_in=n_in, operator=operator, activation=activation,
        compute_dtype=compute_dtype)

    out2d = pl.pallas_call(
        kernel,
        out_shape=jax.ShapeDtypeStruct((rows_p, L2), out_dtype),
        grid=grid,
        in_specs=in_specs,
        out_specs=out_spec,
        compiler_params=pltpu.CompilerParams(
            dimension_semantics=semantics,
            vmem_limit_bytes=vmem_limit,
        ),
    )(*operands)

    return out2d.reshape(tgt_shape)


# ----------------------------- demo / check ----------------------------------

if __name__ == "__main__":
    key = jax.random.PRNGKey(0)
    k1, k2, k3 = jax.random.split(key, 3)

    batch, n_nodes, feat = 2, 16, 32

    # collection of tensors (mixed ranks, exercising the broadcast + folding path)
    t1 = jax.random.normal(k1, (batch, n_nodes, feat), dtype=jnp.float32)
    t2 = jax.random.normal(k2, (n_nodes, feat), dtype=jnp.float32)  # lower rank
    t3 = jax.random.normal(k3, (batch, n_nodes, feat), dtype=jnp.float32)

    out = reducer_forward((t1, t2, t3), operator="add", activation="relu")
    out = jax.block_until_ready(out)
    ref = jnp.maximum(t1 + jnp.broadcast_to(t2, t1.shape) + t3, 0.0)
    assert out.shape == ref.shape and out.dtype == ref.dtype
    assert jnp.allclose(out, ref, atol=1e-5, rtol=1e-5), "add/relu mismatch"

    # "mul" + identity path (mixed rank)
    out_mul = reducer_forward((t1, t2), operator="mul", activation="identity")
    out_mul = jax.block_until_ready(out_mul)
    ref_mul = t1 * jnp.broadcast_to(t2, t1.shape)
    assert jnp.allclose(out_mul, ref_mul, atol=1e-5, rtol=1e-5), "mul mismatch"

    # equal-rank path (no broadcast): exercises the dense (R, C) re-factorisation
    out_eq = reducer_forward((t1, t3), operator="add", activation="tanh")
    out_eq = jax.block_until_ready(out_eq)
    ref_eq = jnp.tanh(t1 + t3)
    assert jnp.allclose(out_eq, ref_eq, atol=1e-5, rtol=1e-5), "equal-rank mismatch"

    print("KERNEL_OK")
</pallas_src>

<mosaic_0001>
module attributes {stable_mosaic.version = 11 : i64} {
  func.func @_reducer_kernel(%arg0: i32, %arg1: memref<8x128xf32, #tpu.memory_space<vmem>>, %arg2: memref<4x128xf32, #tpu.memory_space<vmem>>, %arg3: memref<8x128xf32, #tpu.memory_space<vmem>>, %arg4: memref<8x128xf32, #tpu.memory_space<vmem>>) attributes {dimension_semantics = [#tpu.dimension_semantics<parallel>], iteration_bounds = array<i64: 1>, scalar_prefetch = 0 : i64, scratch_operands = 0 : i64, tpu.core_type = #tpu.core_type<tc>, window_params = [{transform_indices = @transform_0, window_bounds = array<i64: 8, 128>}, {pipeline_mode = #tpu.pipeline_mode<synchronous>, transform_indices = @transform_1, window_bounds = array<i64: 4, 128>}, {transform_indices = @transform_2, window_bounds = array<i64: 8, 128>}, {transform_indices = @transform_3, window_bounds = array<i64: 8, 128>}]} {
    %c0 = arith.constant 0 : index
    %c0_0 = arith.constant 0 : index
    %0 = vector.load %arg1[%c0, %c0_0] : memref<8x128xf32, #tpu.memory_space<vmem>>, vector<8x128xf32>
    %c0_1 = arith.constant 0 : index
    %c0_2 = arith.constant 0 : index
    %1 = vector.load %arg2[%c0_1, %c0_2] : memref<4x128xf32, #tpu.memory_space<vmem>>, vector<4x128xf32>
    %c0_3 = arith.constant 0 : index
    %c0_4 = arith.constant 0 : index
    %2 = vector.load %arg3[%c0_3, %c0_4] : memref<8x128xf32, #tpu.memory_space<vmem>>, vector<8x128xf32>
    %3 = arith.addf %0, %2 : vector<8x128xf32>
    %4 = tpu.concatenate %1, %1 in 0 : vector<4x128xf32>, vector<4x128xf32> -> vector<8x128xf32>
    %5 = arith.addf %3, %4 : vector<8x128xf32>
    %cst = arith.constant 0.000000e+00 : f32
    %6 = vector.broadcast %cst : f32 to vector<8x128xf32>
    %7 = arith.maximumf %5, %6 : vector<8x128xf32>
    %c0_5 = arith.constant 0 : index
    %c0_6 = arith.constant 0 : index
    %8 = vector.load %arg4[%c0_5, %c0_6] : memref<8x128xf32, #tpu.memory_space<vmem>>, vector<8x128xf32>
    tpu.vector_store %arg4[%c0_5, %c0_6], %7 {strides = array<i32>} : memref<8x128xf32, #tpu.memory_space<vmem>>, vector<8x128xf32>,
    return
  }
  func.func @transform_0(%arg0: i32) -> (i32, i32) {
    %c0_i32 = arith.constant 0 : i32
    %c0_i32_0 = arith.constant 0 : i32
    return %arg0, %c0_i32 : i32, i32
  }
  func.func @transform_1(%arg0: i32) -> (i32, i32) {
    %c0_i32 = arith.constant 0 : i32
    %c0_i32_0 = arith.constant 0 : i32
    %c0_i32_1 = arith.constant 0 : i32
    return %c0_i32, %c0_i32_0 : i32, i32
  }
  func.func @transform_2(%arg0: i32) -> (i32, i32) {
    %c0_i32 = arith.constant 0 : i32
    %c0_i32_0 = arith.constant 0 : i32
    return %arg0, %c0_i32 : i32, i32
  }
  func.func @transform_3(%arg0: i32) -> (i32, i32) {
    %c0_i32 = arith.constant 0 : i32
    %c0_i32_0 = arith.constant 0 : i32
    return %arg0, %c0_i32 : i32, i32
  }
}

</mosaic_0001>

<bundles_post_ra>
// kernel: tpu_custom_call.1
= control target key start
LH: loop header
LB: loop body
LE: loop exit
PB: predicated region body
PF: predicated region fallthrough
CT: control target
= control target key end

     0   :  { %8 = vsyncpa [#allocation3], 0  ;;  %s204_s0 = inlined_call_operand.hbm [shape: f32[8,128], index: 0, kind: input, shape index: {}]   ;;  %s205_s1 = inlined_call_operand.hbm [shape: f32[4,128], index: 1, kind: input, shape index: {}]   ;;  %s206_s2 = inlined_call_operand.hbm [shape: f32[8,128], index: 2, kind: input, shape index: {}]   ;;  %s207_s3 = inlined_call_operand.hbm [shape: f32[8,128], index: 3, kind: output, shape index: {}]  }
   0x1   :  { %9 = vsyncpa [#allocation6], 0 }
   0x2   :  { %10 = vsyncpa [#allocation4], 0  ;;  %s168_s12 = smov [#allocation5]   ;;  %s169_s14 = smov [#allocation2]  }
   0x3   :  { %s27_s13 = sshll.u32 %s168_s12, 4  ;;  %s17_s15 = sshll.u32 %s169_s14, 4  ;;  %s28_s13 = int_to_ptr.vmem [resolvable:$true] %s27_s13  ;;  %s18_s15 = int_to_ptr.vmem [resolvable:$true] %s17_s15 }
   0x4   :  { %s90_s16 = scalar_lea.vmem %s28_s13, 64  ;;  %p95_p1 = scmp.lt.s32.totalorder %s28_s13, %s28_s13 }
   0x5   :  { %p91_p0 = scmp.ne.s32.totalorder %s28_s13, %s90_s16  ;;  %p96_p2 = scmp.lt.s32.totalorder %s90_s16, %s90_s16 }
   0x7   :  { %p97_p3 = por %p96_p2, %p95_p1 }
   0x9   :  { %p98_p4 = pnand %p97_p3, %p91_p0 }
   0xb   :  { %101 = shalt.err (!%p98_p4)
}
   0xc   :  { %30 = dma.hbm_to_vmem [thread:$0]  %s205_s1, 64, %s28_s13, [#allocation6]  }
   0xd   :  { %s110_s19 = scalar_lea.vmem %s18_s15, 128  ;;  %p115_p6 = scmp.lt.s32.totalorder %s18_s15, %s18_s15 }
   0xe   :  { %p111_p5 = scmp.ne.s32.totalorder %s18_s15, %s110_s19  ;;  %p116_p7 = scmp.lt.s32.totalorder %s110_s19, %s110_s19 }
  0x10   :  { %p117_p8 = por %p116_p7, %p115_p6 }
  0x12   :  { %p118_p9 = pnand %p117_p8, %p111_p5 }
  0x14   :  { %121 = shalt.err (!%p118_p9)
}
  0x15   :  { %20 = dma.hbm_to_vmem [thread:$0]  %s204_s0, 128, %s18_s15, [#allocation3]  }
  0x16   :  { %s170_s22 = smov [#allocation7]  }
  0x17   :  { %s37_s23 = sshll.u32 %s170_s22, 4  ;;  %s38_s23 = int_to_ptr.vmem [resolvable:$true] %s37_s23 }
  0x18   :  { %s130_s24 = scalar_lea.vmem %s38_s23, 128  ;;  %p135_p11 = scmp.lt.s32.totalorder %s38_s23, %s38_s23 }
  0x19   :  { %p131_p10 = scmp.ne.s32.totalorder %s38_s23, %s130_s24  ;;  %p136_p12 = scmp.lt.s32.totalorder %s130_s24, %s130_s24 }
  0x1b   :  { %p137_p13 = por %p136_p12, %p135_p11 }
  0x1d   :  { %p138_p0 = pnand %p137_p13, %p131_p10 }
  0x1f   :  { %141 = shalt.err (!%p138_p0)
}
  0x20   :  { %40 = dma.hbm_to_vmem [thread:$0]  %s206_s2, 128, %s38_s23, [#allocation6]  }
  0x21   :  { %162 = dma.done.wait [#allocation3], 128  }
  0x22   :  { %163 = vsyncadd [#allocation3], 4294967168 }
  0x23   :  { %164 = dma.done.wait [#allocation6], 192  }
  0x24   :  { %165 = vsyncadd [#allocation6], 4294967104  ;;  %v50_v0 = vld [vmem:[#allocation2] sm:$0xff]  ;;  %v51_v1 = vld [vmem:[#allocation5] sm:$0xf]  ;;  %vm57_vm0 = vcmask 1043456  }
  0x25   :  { %v52_v2 = vld [vmem:[#allocation7] sm:$0xff]  ;;  %v55_v4 = vrot.slane %v51_v1, 4  ;;  %s171_s0 = smov [#allocation8]  }
  0x26   :  { %v53_v3 = vadd.f32 %v52_v2, %v50_v0  ;;  %s68_s26 = sshll.u32 %s171_s0, 4  ;;  %s69_s26 = int_to_ptr.vmem [resolvable:$true] %s68_s26 }
  0x27   :  { %v58_v5 = vsel %vm57_vm0, %v51_v1, %v55_v4  ;;  %s142_s27 = scalar_lea.vmem %s69_s26, 128  ;;  %p147_p2 = scmp.lt.s32.totalorder %s69_s26, %s69_s26 }
  0x28   :  { %v59_v6 = vadd.f32 %v58_v5, %v53_v3  ;;  %p143_p1 = scmp.ne.s32.totalorder %s69_s26, %s142_s27  ;;  %p148_p3 = scmp.lt.s32.totalorder %s142_s27, %s142_s27 }
  0x2a   :  { %v60_v7 = vmax.f32 %v59_v6, 0.0  ;;  %p149_p4 = por %p148_p3, %p147_p2 }
  0x2c   :  { %61 = vst [vmem:[#allocation8] sm:$0xff] %v60_v7  ;;  %p150_p5 = pnand %p149_p4, %p143_p1 }
  0x2e   :  { %153 = shalt.err (!%p150_p5)
}
  0x2f   :  { %71 = dma.vmem_to_hbm [thread:$0]  %s69_s26, 128, %s207_s3, [#allocation4]  }
  0x30   :  { %166 = dma.done.wait [#allocation4], 128  }
  0x31   :  { %167 = vsyncadd [#allocation4], 4294967168 }
  0x32   :  { %75 = vsyncpa [#allocation3], 1 }
  0x33   :  { %76 = vsyncpa [#allocation6], 1 }
  0x34   :  { %77 = vsyncpa [#allocation4], 1 }

</bundles_post_ra>
